<compile_context>
chip_gen: v5e
topology: v5e:2x2
jax: 0.10.0
libtpu: 0.0.40
codegen_flags: <defaults>
</compile_context>

<pallas_src>
import numpy as np
import jax
import jax.numpy as jnp
from jax.experimental import pallas as pl
from jax.experimental.pallas import tpu as pltpu

K = 7            # kernel_size
PAD = K // 2     # padding = 3


def _build_toeplitz_weights(conv_w, H, W, avg_scale=1.0):
    """Turn the (1, 2, K, K) conv weight into (2, H*W, H*W) matmul weights.

    With the channel-sum / channel-max maps flattened over (H, W):
        conv2d(cat([sum*avg_scale, mx], 1), conv_w, padding=PAD).flatten()
          == sum_flat @ M[0] + mx_flat @ M[1]
    Rows index the flattened *input* position, columns the *output* position;
    zero padding is encoded simply by omitting out-of-range taps.  The 1/C
    mean normalization is folded into M[0] via `avg_scale`.
    """
    w = np.asarray(conv_w, dtype=np.float32).reshape(2, K, K).copy()
    w[0] *= np.float32(avg_scale)
    M = np.zeros((2, H, W, H, W), dtype=np.float32)
    oh = np.arange(H)
    ow = np.arange(W)
    for c in range(2):
        for ki in range(K):
            for kj in range(K):
                ih = oh + ki - PAD            # input row feeding output row `oh`
                iw = ow + kj - PAD            # input col feeding output col `ow`
                vh = (ih >= 0) & (ih < H)
                vw = (iw >= 0) & (iw < W)
                if not (vh.any() and vw.any()):
                    continue
                M[c,
                  ih[vh][:, None], iw[vw][None, :],
                  oh[vh][:, None], ow[vw][None, :]] += w[c, ki, kj]
    return jnp.asarray(M.reshape(2, H * W, H * W))


def _pick_block_n(N, C, HW, budget_bytes=4 << 20):
    """Images per grid step.

    Whole batch if the slab is small; otherwise the largest multiple of 8
    that divides N and fits the budget (keeps the (8,128) layout rule for the
    (block_n, HW) output block and bounds per-step VMEM for v7x).
    """
    per_img = C * HW * 4
    if N * per_img <= budget_bytes:
        return N
    best = None
    bn = 8
    while bn < N and bn * per_img <= budget_bytes:
        if N % bn == 0:
            best = bn
        bn += 8
    return best if best is not None else N


def sab_kernel(m_ref, x_ref, o_ref):
    # m_ref : VMEM (2, HW, HW) f32   -- Toeplitz conv weights (resident across steps)
    # x_ref : VMEM (block_n, C, HW)  -- lane axis = flattened spatial (lane-dense)
    # o_ref : VMEM (block_n, HW)
    x = x_ref[...].astype(jnp.float32)                     # (Bn, C, HW)
    csum = jnp.sum(x, axis=1)                              # (Bn, HW) channel sum
    cmax = jnp.max(x, axis=1)                              # (Bn, HW) channel max
    # 7x7 "same" conv (2 in-ch -> 1 out-ch) as two MXU matmuls; the 1/C mean
    # scale is pre-folded into m_ref[0].
    pre = jnp.dot(csum, m_ref[0], preferred_element_type=jnp.float32)
    pre = pre + jnp.dot(cmax, m_ref[1], preferred_element_type=jnp.float32)
    o_ref[...] = jax.nn.sigmoid(pre).astype(o_ref.dtype)   # unmasked lane-dense store


def sab_forward(x, conv_w, block_n=None):
    """x: (N, C, H, W), conv_w: (1, 2, K, K) -> (N, 1, H, W)."""
    N, C, H, W = x.shape
    HW = H * W

    # The Toeplitz matrix is O((H*W)^2); fine for typical SAB feature maps.
    assert 2 * HW * HW * 4 <= 16 * 1024 * 1024, (
        "H*W too large for the conv-as-matmul path")
    # TODO(synk): for large H*W, switch to a lane-rolled shift-and-accumulate
    # conv (precompute 2*K lane-rolled planes with pltpu.roll) plus H tiling.

    m = _build_toeplitz_weights(conv_w, H, W, avg_scale=1.0 / C)  # (2, HW, HW)
    if block_n is None:
        block_n = _pick_block_n(N, C, HW)
    assert N % block_n == 0

    x_flat = x.reshape(N, C, HW)                           # lane axis = H*W

    out_flat = pl.pallas_call(
        sab_kernel,
        out_shape=jax.ShapeDtypeStruct((N, HW), x.dtype),
        grid_spec=pltpu.PrefetchScalarGridSpec(
            num_scalar_prefetch=0,
            grid=(N // block_n,),
            in_specs=[
                # Constant block index -> fetched once, stays resident in VMEM.
                pl.BlockSpec((2, HW, HW), lambda n: (0, 0, 0)),
                pl.BlockSpec((block_n, C, HW), lambda n: (n, 0, 0)),
            ],
            out_specs=pl.BlockSpec((block_n, HW), lambda n: (n, 0)),
        ),
        compiler_params=pltpu.CompilerParams(
            dimension_semantics=("parallel",)),
    )(m, x_flat)

    return out_flat.reshape(N, 1, H, W)


def sab_reference(x, conv_w):
    """Pure-JAX reference matching the PyTorch forward."""
    avg = jnp.mean(x, axis=1, keepdims=True)
    mx = jnp.max(x, axis=1, keepdims=True)
    feat = jnp.concatenate([avg, mx], axis=1)              # (N, 2, H, W)
    out = jax.lax.conv_general_dilated(
        feat, conv_w,
        window_strides=(1, 1),
        padding=((PAD, PAD), (PAD, PAD)),
        dimension_numbers=("NCHW", "OIHW", "NCHW"),
    )
    return jax.nn.sigmoid(out)


if __name__ == "__main__":
    key = jax.random.PRNGKey(0)
    k_x, k_w = jax.random.split(key)

    # Small deterministic example: batch=2, channels=4, spatial=16x16.
    N, C, H, W = 2, 4, 16, 16
    x = jax.random.normal(k_x, (N, C, H, W), dtype=jnp.float32)

    # Conv2d(2, 1, 7, padding=3, bias=False) with 'normal' init (std=0.02).
    conv_w = 0.02 * jax.random.normal(k_w, (1, 2, K, K), dtype=jnp.float32)

    out = jax.block_until_ready(sab_forward(x, conv_w))
    ref = jax.block_until_ready(sab_reference(x, conv_w))

    assert out.shape == (N, 1, H, W)
    # Tolerance covers MXU accumulation-order / precision differences vs the
    # XLA convolution reference; any semantic bug would be orders larger.
    assert jnp.allclose(out, ref, atol=5e-4, rtol=5e-4), "mismatch vs reference"

    print("KERNEL_OK")
</pallas_src>

<mosaic_0001>
module attributes {stable_mosaic.version = 11 : i64} {
  func.func @sab_kernel(%arg0: i32, %arg1: memref<2x256x256xf32, #tpu.memory_space<vmem>>, %arg2: memref<2x4x256xf32, #tpu.memory_space<vmem>>, %arg3: memref<2x256xf32, #tpu.memory_space<vmem>>) attributes {dimension_semantics = [#tpu.dimension_semantics<parallel>], iteration_bounds = array<i64: 1>, scalar_prefetch = 0 : i64, scratch_operands = 0 : i64, tpu.core_type = #tpu.core_type<tc>, window_params = [{pipeline_mode = #tpu.pipeline_mode<synchronous>, transform_indices = @transform_0, window_bounds = array<i64: 2, 256, 256>}, {transform_indices = @transform_1, window_bounds = array<i64: 2, 4, 256>}, {transform_indices = @transform_2, window_bounds = array<i64: 2, 256>}]} {
    %c0 = arith.constant 0 : index
    %c0_0 = arith.constant 0 : index
    %c0_1 = arith.constant 0 : index
    %0 = vector.load %arg2[%c0, %c0_0, %c0_1] : memref<2x4x256xf32, #tpu.memory_space<vmem>>, vector<2x4x256xf32>
    %cst = arith.constant dense<0.000000e+00> : vector<2x256xf32>
    %1 = vector.multi_reduction <add>, %0, %cst [1] : vector<2x4x256xf32> to vector<2x256xf32>
    %cst_2 = arith.constant dense<0xFF800000> : vector<2x256xf32>
    %2 = vector.multi_reduction <maximumf>, %0, %cst_2 [1] : vector<2x4x256xf32> to vector<2x256xf32>
    %c0_3 = arith.constant 0 : index
    %c0_4 = arith.constant 0 : index
    %c0_5 = arith.constant 0 : index
    %3 = vector.load %arg1[%c0_3, %c0_4, %c0_5] : memref<2x256x256xf32, #tpu.memory_space<vmem>>, vector<1x256x256xf32>
    %4 = vector.shape_cast %3 : vector<1x256x256xf32> to vector<256x256xf32>
    %cst_6 = arith.constant dense<0.000000e+00> : vector<2x256xf32>
    %5 = tpu.matmul %1, %4, %cst_6 {dimension_numbers = #tpu.dot_dimension_numbers<[1], [0], [0], [1], [0, 0, 1, 1], [], []>} : vector<2x256xf32>, vector<256x256xf32>, vector<2x256xf32> -> vector<2x256xf32>
    %c1 = arith.constant 1 : index
    %c0_7 = arith.constant 0 : index
    %c0_8 = arith.constant 0 : index
    %6 = vector.load %arg1[%c1, %c0_7, %c0_8] : memref<2x256x256xf32, #tpu.memory_space<vmem>>, vector<1x256x256xf32>
    %7 = vector.shape_cast %6 : vector<1x256x256xf32> to vector<256x256xf32>
    %cst_9 = arith.constant dense<0.000000e+00> : vector<2x256xf32>
    %8 = tpu.matmul %2, %7, %cst_9 {dimension_numbers = #tpu.dot_dimension_numbers<[1], [0], [0], [1], [0, 0, 1, 1], [], []>} : vector<2x256xf32>, vector<256x256xf32>, vector<2x256xf32> -> vector<2x256xf32>
    %9 = arith.addf %5, %8 : vector<2x256xf32>
    %10 = arith.negf %9 : vector<2x256xf32>
    %11 = math.exp %10 : vector<2x256xf32>
    %cst_10 = arith.constant 1.000000e+00 : f32
    %12 = vector.broadcast %cst_10 : f32 to vector<2x256xf32>
    %13 = arith.addf %12, %11 : vector<2x256xf32>
    %14 = arith.divf %12, %13 : vector<2x256xf32>
    %c0_11 = arith.constant 0 : index
    %c0_12 = arith.constant 0 : index
    %15 = vector.load %arg3[%c0_11, %c0_12] : memref<2x256xf32, #tpu.memory_space<vmem>>, vector<2x256xf32>
    tpu.vector_store %arg3[%c0_11, %c0_12], %14 {strides = array<i32>} : memref<2x256xf32, #tpu.memory_space<vmem>>, vector<2x256xf32>,
    return
  }
  func.func @transform_0(%arg0: i32) -> (i32, i32, i32) {
    %c0_i32 = arith.constant 0 : i32
    %c0_i32_0 = arith.constant 0 : i32
    %c0_i32_1 = arith.constant 0 : i32
    %c0_i32_2 = arith.constant 0 : i32
    return %c0_i32, %c0_i32_0, %c0_i32_1 : i32, i32, i32
  }
  func.func @transform_1(%arg0: i32) -> (i32, i32, i32) {
    %c0_i32 = arith.constant 0 : i32
    %c0_i32_0 = arith.constant 0 : i32
    %c0_i32_1 = arith.constant 0 : i32
    return %arg0, %c0_i32, %c0_i32_0 : i32, i32, i32
  }
  func.func @transform_2(%arg0: i32) -> (i32, i32) {
    %c0_i32 = arith.constant 0 : i32
    %c0_i32_0 = arith.constant 0 : i32
    return %arg0, %c0_i32 : i32, i32
  }
}

</mosaic_0001>

<bundles_post_ra>
// kernel: tpu_custom_call.1
= control target key start
LH: loop header
LB: loop body
LE: loop exit
PB: predicated region body
PF: predicated region fallthrough
CT: control target
= control target key end

     0   :  { %7 = vsyncpa [#allocation3], 0  ;;  %s640_s0 = inlined_call_operand.hbm [shape: f32[2,256,256], index: 0, kind: input, shape index: {}]   ;;  %s641_s1 = inlined_call_operand.hbm [shape: f32[2,4,256], index: 1, kind: input, shape index: {}]   ;;  %s642_s2 = inlined_call_operand.hbm [shape: f32[2,256], index: 2, kind: output, shape index: {}]  }
   0x1   :  { %8 = vsyncpa [#allocation6], 0 }
   0x2   :  { %9 = vsyncpa [#allocation4], 0  ;;  %s14_s11 = sshll.u32 %s640_s0, 4  ;;  %s591_s12 = smov [#allocation2]   ;;  %s15_s11 = int_to_ptr.hbm [resolvable:$true] %s14_s11 }
   0x3   :  { %s16_s13 = sshll.u32 %s591_s12, 4  ;;  %s27_s16 = sshll.u32 %s641_s1, 4  ;;  %s17_s13 = int_to_ptr.vmem [resolvable:$true] %s16_s13  ;;  %s28_s16 = int_to_ptr.hbm [resolvable:$true] %s27_s16 }
   0x4   :  { %s592_s17 = smov 256   ;;  %s593_s18 = smov 16  }
   0x5   :  { %22 = dma.hbm_to_vmem [thread:$0]  %s15_s11, 16384, %s17_s13, [#allocation3], %s592_s17, %s592_s17, %s593_s18  }
   0x6   :  { %s594_s19 = smov [#allocation5]   ;;  %s595_s21 = smov 128  }
   0x7   :  { %s29_s20 = sshll.u32 %s594_s19, 4  ;;  %s596_s22 = smov 8   ;;  %s30_s20 = int_to_ptr.vmem [resolvable:$true] %s29_s20 }
   0x8   :  { %35 = dma.hbm_to_vmem [thread:$0]  %s28_s16, 256, %s30_s20, [#allocation6], %s595_s21, %s595_s21, %s596_s22  }
   0x9   :  { %585 = dma.done.wait [#allocation3], 16384  }
   0xa   :  { %586 = vsyncadd [#allocation3], 4294950912 }
   0xb   :  { %587 = dma.done.wait [#allocation6], 256  }
   0xc   :  { %588 = vsyncadd [#allocation6], 4294967040  ;;  %v222_v0 = vld [vmem:[#allocation2 + $0x2f0] sm:$0xff]  ;;  %v223_v1 = vld [vmem:[#allocation2 + $0x2f8] sm:$0xff]  ;;  %vm59_vm0 = vcmask 1043456   ;;  %vm260_vm1 = vcmask 1041409  }
   0xd   :  { %v220_v2 = vld [vmem:[#allocation2 + $0x2e0] sm:$0xff]  ;;  %265 = vmatpush.msra.mxu0 %v222_v0  ;;  %305 = vmatpush.msra.mxu2 %v223_v1  ;;  %v254_v3 = vld [vmem:[#allocation2 + $0x3f0] sm:$0xff]  ;;  %v221_v4 = vld [vmem:[#allocation2 + $0x2e8] sm:$0xff]  ;;  %s597_s0 = smov [#allocation7]   ;;  %s485_s25 = sshll.u32 %s642_s2, 4  ;;  %vm474_vm9 = vcmask 1041408   ;;  %s486_s25 = int_to_ptr.hbm [resolvable:$true] %s485_s25 }
   0xe   :  { %v255_v5 = vld [vmem:[#allocation2 + $0x3f8] sm:$0xff]  ;;  %285 = vmatpush.msra.mxu1 %v254_v3  ;;  %v218_v6 = vld [vmem:[#allocation2 + $0x2d0] sm:$0xff]  ;;  %v252_v7 = vld [vmem:[#allocation2 + $0x3e0] sm:$0xff]  ;;  %s483_s1 = sshll.u32 %s597_s0, 4  ;;  %s484_s1 = int_to_ptr.vmem [resolvable:$true] %s483_s1 }
   0xf   :  { %325 = vmatpush.msra.mxu3 %v255_v5  ;;  %v219_v8 = vld [vmem:[#allocation2 + $0x2d8] sm:$0xff]  ;;  %266 = vmatpush.msra.mxu0 %v220_v2  ;;  %v253_v9 = vld [vmem:[#allocation2 + $0x3e8] sm:$0xff]  ;;  %v250_v10 = vld [vmem:[#allocation2 + $0x3d0] sm:$0xff] }
  0x10   :  { %306 = vmatpush.msra.mxu2 %v221_v4  ;;  %286 = vmatpush.msra.mxu1 %v252_v7  ;;  %v216_v11 = vld [vmem:[#allocation2 + $0x2c0] sm:$0xff]  ;;  %v217_v12 = vld [vmem:[#allocation2 + $0x2c8] sm:$0xff]  ;;  %v251_v13 = vld [vmem:[#allocation2 + $0x3d8] sm:$0xff] }
  0x11   :  { %326 = vmatpush.msra.mxu3 %v253_v9  ;;  %267 = vmatpush.msra.mxu0 %v218_v6  ;;  %v248_v14 = vld [vmem:[#allocation2 + $0x3c0] sm:$0xff]  ;;  %v249_v15 = vld [vmem:[#allocation2 + $0x3c8] sm:$0xff]  ;;  %v214_v16 = vld [vmem:[#allocation2 + $0x2b0] sm:$0xff] }
  0x12   :  { %307 = vmatpush.msra.mxu2 %v219_v8  ;;  %287 = vmatpush.msra.mxu1 %v250_v10  ;;  %v215_v17 = vld [vmem:[#allocation2 + $0x2b8] sm:$0xff]  ;;  %v246_v18 = vld [vmem:[#allocation2 + $0x3b0] sm:$0xff]  ;;  %v212_v20 = vld [vmem:[#allocation2 + $0x2a0] sm:$0xff] }
  0x13   :  { %327 = vmatpush.msra.mxu3 %v251_v13  ;;  %268 = vmatpush.msra.mxu0 %v216_v11  ;;  %v247_v19 = vld [vmem:[#allocation2 + $0x3b8] sm:$0xff]  ;;  %v213_v21 = vld [vmem:[#allocation2 + $0x2a8] sm:$0xff]  ;;  %v244_v22 = vld [vmem:[#allocation2 + $0x3a0] sm:$0xff] }
  0x14   :  { %308 = vmatpush.msra.mxu2 %v217_v12  ;;  %288 = vmatpush.msra.mxu1 %v248_v14  ;;  %v245_v23 = vld [vmem:[#allocation2 + $0x3a8] sm:$0xff]  ;;  %v210_v24 = vld [vmem:[#allocation2 + $0x290] sm:$0xff]  ;;  %v211_v25 = vld [vmem:[#allocation2 + $0x298] sm:$0xff] }
  0x15   :  { %328 = vmatpush.msra.mxu3 %v249_v15  ;;  %269 = vmatpush.msra.mxu0 %v214_v16  ;;  %v242_v26 = vld [vmem:[#allocation2 + $0x390] sm:$0xff]  ;;  %v243_v27 = vld [vmem:[#allocation2 + $0x398] sm:$0xff]  ;;  %v208_v28 = vld [vmem:[#allocation2 + $0x280] sm:$0xff] }
  0x16   :  { %309 = vmatpush.msra.mxu2 %v215_v17  ;;  %289 = vmatpush.msra.mxu1 %v246_v18  ;;  %v209_v29 = vld [vmem:[#allocation2 + $0x288] sm:$0xff]  ;;  %v240_v30 = vld [vmem:[#allocation2 + $0x380] sm:$0xff]  ;;  %v206_v32 = vld [vmem:[#allocation2 + $0x270] sm:$0xff] }
  0x17   :  { %329 = vmatpush.msra.mxu3 %v247_v19  ;;  %270 = vmatpush.msra.mxu0 %v212_v20  ;;  %v241_v31 = vld [vmem:[#allocation2 + $0x388] sm:$0xff]  ;;  %v207_v33 = vld [vmem:[#allocation2 + $0x278] sm:$0xff]  ;;  %v238_v34 = vld [vmem:[#allocation2 + $0x370] sm:$0xff] }
  0x18   :  { %310 = vmatpush.msra.mxu2 %v213_v21  ;;  %290 = vmatpush.msra.mxu1 %v244_v22  ;;  %v239_v35 = vld [vmem:[#allocation2 + $0x378] sm:$0xff]  ;;  %v204_v36 = vld [vmem:[#allocation2 + $0x260] sm:$0xff]  ;;  %v205_v37 = vld [vmem:[#allocation2 + $0x268] sm:$0xff] }
  0x19   :  { %330 = vmatpush.msra.mxu3 %v245_v23  ;;  %271 = vmatpush.msra.mxu0 %v210_v24  ;;  %v236_v38 = vld [vmem:[#allocation2 + $0x360] sm:$0xff]  ;;  %v237_v39 = vld [vmem:[#allocation2 + $0x368] sm:$0xff]  ;;  %v202_v40 = vld [vmem:[#allocation2 + $0x250] sm:$0xff] }
  0x1a   :  { %311 = vmatpush.msra.mxu2 %v211_v25  ;;  %291 = vmatpush.msra.mxu1 %v242_v26  ;;  %v203_v41 = vld [vmem:[#allocation2 + $0x258] sm:$0xff]  ;;  %v234_v42 = vld [vmem:[#allocation2 + $0x350] sm:$0xff]  ;;  %v200_v44 = vld [vmem:[#allocation2 + $0x240] sm:$0xff] }
  0x1b   :  { %331 = vmatpush.msra.mxu3 %v243_v27  ;;  %272 = vmatpush.msra.mxu0 %v208_v28  ;;  %v235_v43 = vld [vmem:[#allocation2 + $0x358] sm:$0xff]  ;;  %v201_v45 = vld [vmem:[#allocation2 + $0x248] sm:$0xff]  ;;  %v232_v46 = vld [vmem:[#allocation2 + $0x340] sm:$0xff] }
  0x1c   :  { %312 = vmatpush.msra.mxu2 %v209_v29  ;;  %292 = vmatpush.msra.mxu1 %v240_v30  ;;  %v233_v47 = vld [vmem:[#allocation2 + $0x348] sm:$0xff]  ;;  %v198_v48 = vld [vmem:[#allocation2 + $0x230] sm:$0xff]  ;;  %v199_v49 = vld [vmem:[#allocation2 + $0x238] sm:$0xff] }
  0x1d   :  { %332 = vmatpush.msra.mxu3 %v241_v31  ;;  %273 = vmatpush.msra.mxu0 %v206_v32  ;;  %v230_v50 = vld [vmem:[#allocation2 + $0x330] sm:$0xff]  ;;  %v231_v51 = vld [vmem:[#allocation2 + $0x338] sm:$0xff]  ;;  %v196_v52 = vld [vmem:[#allocation2 + $0x220] sm:$0xff] }
  0x1e   :  { %313 = vmatpush.msra.mxu2 %v207_v33  ;;  %293 = vmatpush.msra.mxu1 %v238_v34  ;;  %v197_v53 = vld [vmem:[#allocation2 + $0x228] sm:$0xff]  ;;  %v228_v54 = vld [vmem:[#allocation2 + $0x320] sm:$0xff]  ;;  %v194_v56 = vld [vmem:[#allocation2 + $0x210] sm:$0xff] }
  0x1f   :  { %333 = vmatpush.msra.mxu3 %v239_v35  ;;  %274 = vmatpush.msra.mxu0 %v204_v36  ;;  %v229_v55 = vld [vmem:[#allocation2 + $0x328] sm:$0xff]  ;;  %v195_v57 = vld [vmem:[#allocation2 + $0x218] sm:$0xff]  ;;  %v226_v58 = vld [vmem:[#allocation2 + $0x310] sm:$0xff] }
  0x20   :  { %314 = vmatpush.msra.mxu2 %v205_v37  ;;  %294 = vmatpush.msra.mxu1 %v236_v38  ;;  %v227_v59 = vld [vmem:[#allocation2 + $0x318] sm:$0xff]  ;;  %v192_v60 = vld [vmem:[#allocation2 + $0x200] sm:$0xff]  ;;  %v193_v61 = vld [vmem:[#allocation2 + $0x208] sm:$0xff] }
  0x21   :  { %334 = vmatpush.msra.mxu3 %v237_v39  ;;  %275 = vmatpush.msra.mxu0 %v202_v40  ;;  %v157_v62 = vld [vmem:[#allocation2 + $0xf0] sm:$0xff]  ;;  %v158_v63 = vld [vmem:[#allocation2 + $0xf8] sm:$0xff]  ;;  %v224_v0 = vld [vmem:[#allocation2 + $0x300] sm:$0xff] }
  0x22   :  { %315 = vmatpush.msra.mxu2 %v203_v41  ;;  %295 = vmatpush.msra.mxu1 %v234_v42  ;;  %v225_v1 = vld [vmem:[#allocation2 + $0x308] sm:$0xff]  ;;  %v155_v2 = vld [vmem:[#allocation2 + $0xe0] sm:$0xff]  ;;  %v189_v3 = vld [vmem:[#allocation2 + $0x1f0] sm:$0xff] }
  0x23   :  { %335 = vmatpush.msra.mxu3 %v235_v43  ;;  %276 = vmatpush.msra.mxu0 %v200_v44  ;;  %v156_v4 = vld [vmem:[#allocation2 + $0xe8] sm:$0xff]  ;;  %v190_v5 = vld [vmem:[#allocation2 + $0x1f8] sm:$0xff]  ;;  %v153_v6 = vld [vmem:[#allocation2 + $0xd0] sm:$0xff] }
  0x24   :  { %316 = vmatpush.msra.mxu2 %v201_v45  ;;  %296 = vmatpush.msra.mxu1 %v232_v46  ;;  %v187_v7 = vld [vmem:[#allocation2 + $0x1e0] sm:$0xff]  ;;  %v154_v8 = vld [vmem:[#allocation2 + $0xd8] sm:$0xff]  ;;  %v188_v9 = vld [vmem:[#allocation2 + $0x1e8] sm:$0xff] }
  0x25   :  { %336 = vmatpush.msra.mxu3 %v233_v47  ;;  %277 = vmatpush.msra.mxu0 %v198_v48  ;;  %v151_v10 = vld [vmem:[#allocation2 + $0xc0] sm:$0xff]  ;;  %v185_v11 = vld [vmem:[#allocation2 + $0x1d0] sm:$0xff]  ;;  %v152_v12 = vld [vmem:[#allocation2 + $0xc8] sm:$0xff] }
  0x26   :  { %317 = vmatpush.msra.mxu2 %v199_v49  ;;  %297 = vmatpush.msra.mxu1 %v230_v50  ;;  %v186_v13 = vld [vmem:[#allocation2 + $0x1d8] sm:$0xff]  ;;  %v44_v14 = vld [vmem:[#allocation5] sm:$0xff]  ;;  %v149_v15 = vld [vmem:[#allocation2 + $0xb0] sm:$0xff] }
  0x27   :  { %337 = vmatpush.msra.mxu3 %v231_v51  ;;  %278 = vmatpush.msra.mxu0 %v196_v52  ;;  %v183_v16 = vld [vmem:[#allocation2 + $0x1c0] sm:$0xff]  ;;  %v45_v17 = vld [vmem:[#allocation5 + $0x8] sm:$0xff]  ;;  %48 = vst [vmem:[#allocation1] ss:$2 sm:$0xff] %v44_v14  ;;  %v150_v18 = vld [vmem:[#allocation2 + $0xb8] sm:$0xff] }
  0x28   :  { %318 = vmatpush.msra.mxu2 %v197_v53  ;;  %298 = vmatpush.msra.mxu1 %v228_v54  ;;  %v184_v19 = vld [vmem:[#allocation2 + $0x1c8] sm:$0xff]  ;;  %52 = vst [vmem:[#allocation1 + $0x10] ss:$2 sm:$0xff] %v45_v17  ;;  %v147_v20 = vld [vmem:[#allocation2 + $0xa0] sm:$0xff]  ;;  %v181_v21 = vld [vmem:[#allocation2 + $0x1b0] sm:$0xff] }
  0x29   :  { %338 = vmatpush.msra.mxu3 %v229_v55  ;;  %279 = vmatpush.msra.mxu0 %v194_v56  ;;  %v148_v22 = vld [vmem:[#allocation2 + $0xa8] sm:$0xff]  ;;  %v182_v23 = vld [vmem:[#allocation2 + $0x1b8] sm:$0xff]  ;;  %v145_v24 = vld [vmem:[#allocation2 + $0x90] sm:$0xff] }
  0x2a   :  { %319 = vmatpush.msra.mxu2 %v195_v57  ;;  %299 = vmatpush.msra.mxu1 %v226_v58  ;;  %v179_v25 = vld [vmem:[#allocation2 + $0x1a0] sm:$0xff]  ;;  %v146_v26 = vld [vmem:[#allocation2 + $0x98] sm:$0xff]  ;;  %v180_v27 = vld [vmem:[#allocation2 + $0x1a8] sm:$0xff] }
  0x2b   :  { %339 = vmatpush.msra.mxu3 %v227_v59  ;;  %280 = vmatpush.msra.mxu0 %v192_v60  ;;  %v143_v28 = vld [vmem:[#allocation2 + $0x80] sm:$0xff]  ;;  %v177_v29 = vld [vmem:[#allocation2 + $0x190] sm:$0xff]  ;;  %v144_v30 = vld [vmem:[#allocation2 + $0x88] sm:$0xff] }
  0x2c   :  { %320 = vmatpush.msra.mxu2 %v193_v61  ;;  %300 = vmatpush.msra.mxu1 %v224_v0  ;;  %v178_v31 = vld [vmem:[#allocation2 + $0x198] sm:$0xff]  ;;  %v141_v32 = vld [vmem:[#allocation2 + $0x70] sm:$0xff]  ;;  %v175_v33 = vld [vmem:[#allocation2 + $0x180] sm:$0xff] }
  0x2d   :  { %353 = vmatpush.msrb.mxu0 %v157_v62  ;;  %340 = vmatpush.msra.mxu3 %v225_v1  ;;  %v142_v38 = vld [vmem:[#allocation2 + $0x78] sm:$0xff]  ;;  %v176_v39 = vld [vmem:[#allocation2 + $0x188] sm:$0xff]  ;;  %v139_v41 = vld [vmem:[#allocation2 + $0x60] sm:$0xff] }
  0x2e   :  { %393 = vmatpush.msrb.mxu2 %v158_v63  ;;  %373 = vmatpush.msrb.mxu1 %v189_v3  ;;  %v49_v34 = vld.sshfl [vmem:[#allocation1] sm:$0xff pattern:$0x75316420]  ;;  %v50_v35 = vld.sshfl [vmem:[#allocation1 + $0x8] sm:$0xff pattern:$0x75316420] }
  0x2f   :  { %354 = vmatpush.msrb.mxu0 %v155_v2  ;;  %413 = vmatpush.msrb.mxu3 %v190_v5  ;;  %v53_v36 = vld.sshfl [vmem:[#allocation1 + $0x10] sm:$0xff pattern:$0x75316420]  ;;  %v54_v37 = vld.sshfl [vmem:[#allocation1 + $0x18] sm:$0xff pattern:$0x75316420] }
  0x30   :  { %394 = vmatpush.msrb.mxu2 %v156_v4  ;;  %374 = vmatpush.msrb.mxu1 %v187_v7  ;;  %88 = vst [vmem:[#allocation1] ss:$2 sm:$0xff] %v44_v14  ;;  %v60_v40 = vsel %vm59_vm0, %v49_v34, 0.0  ;;  %v173_v42 = vld [vmem:[#allocation2 + $0x170] sm:$0xff]  ;;  %v74_v43 = vsel %vm59_vm0, %v53_v36, 0.0  ;;  %v67_v44 = vsel %vm59_vm0, %v50_v35, 0.0 }
  0x31   :  { %355 = vmatpush.msrb.mxu0 %v153_v6  ;;  %414 = vmatpush.msrb.mxu3 %v188_v9  ;;  %92 = vst [vmem:[#allocation1 + $0x10] ss:$2 sm:$0xff] %v45_v17  ;;  %v140_v45 = vld [vmem:[#allocation2 + $0x68] sm:$0xff]  ;;  %v174_v46 = vld [vmem:[#allocation2 + $0x178] sm:$0xff]  ;;  %v81_v47 = vsel %vm59_vm0, %v54_v37, 0.0  ;;  %v137_v48 = vld [vmem:[#allocation2 + $0x50] sm:$0xff] }
  0x32   :  { %395 = vmatpush.msrb.mxu2 %v154_v8  ;;  %375 = vmatpush.msrb.mxu1 %v185_v11  ;;  %v171_v49 = vld [vmem:[#allocation2 + $0x160] sm:$0xff]  ;;  %v138_v50 = vld [vmem:[#allocation2 + $0x58] sm:$0xff]  ;;  %v61_v51 = vrot.slane %v60_v40, 4  ;;  %v172_v52 = vld [vmem:[#allocation2 + $0x168] sm:$0xff]  ;;  %v75_v55 = vrot.slane %v74_v43, 4  ;;  %v68_v56 = vrot.slane %v67_v44, 4 }
  0x33   :  { %356 = vmatpush.msrb.mxu0 %v151_v10  ;;  %415 = vmatpush.msrb.mxu3 %v186_v13  ;;  %v135_v53 = vld [vmem:[#allocation2 + $0x40] sm:$0xff]  ;;  %v169_v54 = vld [vmem:[#allocation2 + $0x150] sm:$0xff]  ;;  %v136_v57 = vld [vmem:[#allocation2 + $0x48] sm:$0xff]  ;;  %v82_v60 = vrot.slane %v81_v47, 4 }
  0x34   :  { %396 = vmatpush.msrb.mxu2 %v152_v12  ;;  %376 = vmatpush.msrb.mxu1 %v183_v16  ;;  %v170_v58 = vld [vmem:[#allocation2 + $0x158] sm:$0xff]  ;;  %v133_v59 = vld [vmem:[#allocation2 + $0x30] sm:$0xff]  ;;  %v167_v61 = vld [vmem:[#allocation2 + $0x140] sm:$0xff]  ;;  %v62_v3 = vadd.f32 %v61_v51, %v60_v40  ;;  %v76_v8 = vadd.f32 %v75_v55, %v74_v43  ;;  %v69_v9 = vadd.f32 %v68_v56, %v67_v44 }
  0x35   :  { %357 = vmatpush.msrb.mxu0 %v149_v15  ;;  %416 = vmatpush.msrb.mxu3 %v184_v19  ;;  %v134_v62 = vld [vmem:[#allocation2 + $0x38] sm:$0xff]  ;;  %v168_v63 = vld [vmem:[#allocation2 + $0x148] sm:$0xff]  ;;  %v131_v2 = vld [vmem:[#allocation2 + $0x20] sm:$0xff]  ;;  %v83_v14 = vadd.f32 %v82_v60, %v81_v47 }
  0x36   :  { %397 = vmatpush.msrb.mxu2 %v150_v18  ;;  %377 = vmatpush.msrb.mxu1 %v181_v21  ;;  %v165_v7 = vld [vmem:[#allocation2 + $0x130] sm:$0xff]  ;;  %v132_v17 = vld [vmem:[#allocation2 + $0x28] sm:$0xff]  ;;  %v166_v18 = vld [vmem:[#allocation2 + $0x138] sm:$0xff] }
  0x37   :  { %358 = vmatpush.msrb.mxu0 %v147_v20  ;;  %417 = vmatpush.msrb.mxu3 %v182_v23  ;;  %v89_v0 = vld.sshfl [vmem:[#allocation1] sm:$0xff pattern:$0x75316420]  ;;  %v90_v1 = vld.sshfl [vmem:[#allocation1 + $0x8] sm:$0xff pattern:$0x75316420] }
  0x38   :  { %398 = vmatpush.msrb.mxu2 %v148_v22  ;;  %378 = vmatpush.msrb.mxu1 %v179_v25  ;;  %v93_v4 = vld.sshfl [vmem:[#allocation1 + $0x10] sm:$0xff pattern:$0x75316420]  ;;  %v99_v5 = vsel %vm59_vm0, %v89_v0, -inf  ;;  %v106_v6 = vsel %vm59_vm0, %v90_v1, -inf  ;;  %v129_v22 = vld [vmem:[#allocation2 + $0x10] sm:$0xff] }
  0x39   :  { %359 = vmatpush.msrb.mxu0 %v145_v24  ;;  %418 = vmatpush.msrb.mxu3 %v180_v27  ;;  %v100_v10 = vrot.slane %v99_v5, 4  ;;  %v113_v11 = vsel %vm59_vm0, %v93_v4, -inf  ;;  %v94_v12 = vld.sshfl [vmem:[#allocation1 + $0x18] sm:$0xff pattern:$0x75316420]  ;;  %v107_v13 = vrot.slane %v106_v6, 4 }
  0x3a   :  { %399 = vmatpush.msrb.mxu2 %v146_v26  ;;  %379 = vmatpush.msrb.mxu1 %v177_v29  ;;  %v114_v15 = vrot.slane %v113_v11, 4  ;;  %v120_v16 = vsel %vm59_vm0, %v94_v12, -inf  ;;  %v163_v23 = vld [vmem:[#allocation2 + $0x120] sm:$0xff]  ;;  %v63_v24 = vrot.slane %v62_v3, 2  ;;  %v130_v26 = vld [vmem:[#allocation2 + $0x18] sm:$0xff]  ;;  %v164_v27 = vld [vmem:[#allocation2 + $0x128] sm:$0xff] }
  0x3b   :  { %360 = vmatpush.msrb.mxu0 %v143_v28  ;;  %419 = vmatpush.msrb.mxu3 %v178_v31  ;;  %v101_v19 = vmax.f32 %v99_v5, %v100_v10  ;;  %v108_v20 = vmax.f32 %v106_v6, %v107_v13  ;;  %v121_v21 = vrot.slane %v120_v16, 4  ;;  %v77_v28 = vrot.slane %v76_v8, 2  ;;  %v161_v34 = vld [vmem:[#allocation2 + $0x110] sm:$0xff]  ;;  %v128_v37 = vld [vmem:[#allocation2 + $0x8] sm:$0xff]  ;;  %v159_v43 = vld [vmem:[#allocation2 + $0x100] sm:$0xff] }
  0x3c   :  { %400 = vmatpush.msrb.mxu2 %v144_v30  ;;  %380 = vmatpush.msrb.mxu1 %v175_v33  ;;  %v115_v25 = vmax.f32 %v113_v11, %v114_v15  ;;  %v70_v29 = vrot.slane %v69_v9, 2  ;;  %v127_v33 = vld [vmem:[#allocation2] sm:$0xff]  ;;  %v84_v35 = vrot.slane %v83_v14, 2 }
  0x3d   :  { %361 = vmatpush.msrb.mxu0 %v141_v32  ;;  %420 = vmatpush.msrb.mxu3 %v176_v39  ;;  %v102_v30 = vrot.slane %v101_v19, 2  ;;  %v109_v31 = vrot.slane %v108_v20, 2  ;;  %v122_v32 = vmax.f32 %v120_v16, %v121_v21 }
  0x3e   :  { %401 = vmatpush.msrb.mxu2 %v142_v38  ;;  %381 = vmatpush.msrb.mxu1 %v173_v42  ;;  %v116_v36 = vrot.slane %v115_v25, 2  ;;  %v162_v38 = vld [vmem:[#allocation2 + $0x118] sm:$0xff]  ;;  %v64_v42 = vadd.f32 %v63_v24, %v62_v3  ;;  %v71_v47 = vadd.f32 %v70_v29, %v69_v9  ;;  %v85_v51 = vadd.f32 %v84_v35, %v83_v14 }
  0x3f   :  { %362 = vmatpush.msrb.mxu0 %v139_v41  ;;  %421 = vmatpush.msrb.mxu3 %v174_v46  ;;  %v103_v39 = vmax.f32 %v101_v19, %v102_v30  ;;  %v110_v40 = vmax.f32 %v108_v20, %v109_v31  ;;  %v123_v41 = vrot.slane %v122_v32, 2  ;;  %v160_v46 = vld [vmem:[#allocation2 + $0x108] sm:$0xff] }
  0x40   :  { %402 = vmatpush.msrb.mxu2 %v140_v45  ;;  %382 = vmatpush.msrb.mxu1 %v171_v49  ;;  %v117_v44 = vmax.f32 %v115_v25, %v116_v36  ;;  %v78_v45 = vadd.f32 %v77_v28, %v76_v8  ;;  %v72_v60 = vrot.slane %v71_v47, 1 }
  0x41   :  { %363 = vmatpush.msrb.mxu0 %v137_v48  ;;  %422 = vmatpush.msrb.mxu3 %v172_v52  ;;  %v104_v48 = vrot.slane %v103_v39, 1  ;;  %v111_v49 = vrot.slane %v110_v40, 1 }
  0x42   :  { %403 = vmatpush.msrb.mxu2 %v138_v50  ;;  %383 = vmatpush.msrb.mxu1 %v169_v54  ;;  %v124_v50 = vmax.f32 %v122_v32, %v123_v41  ;;  %v118_v52 = vrot.slane %v117_v44, 1 }
  0x43   :  { %364 = vmatpush.msrb.mxu0 %v135_v53  ;;  %423 = vmatpush.msrb.mxu3 %v170_v58  ;;  %v105_v53 = vmax.f32 %v103_v39, %v104_v48  ;;  %v112_v54 = vmax.f32 %v110_v40, %v111_v49  ;;  %v79_v58 = vrot.slane %v78_v45, 1 }
  0x44   :  { %404 = vmatpush.msrb.mxu2 %v136_v57  ;;  %384 = vmatpush.msrb.mxu1 %v167_v61  ;;  %v125_v55 = vrot.slane %v124_v50, 1  ;;  %v119_v56 = vmax.f32 %v117_v44, %v118_v52  ;;  %v65_v57 = vrot.slane %v64_v42, 1  ;;  %v86_v61 = vrot.slane %v85_v51, 1 }
  0x45   :  { %365 = vmatpush.msrb.mxu0 %v133_v59  ;;  %424 = vmatpush.msrb.mxu3 %v168_v63  ;;  %v80_v1 = vadd.f32 %v79_v58, %v78_v45 }
  0x46   :  { %405 = vmatpush.msrb.mxu2 %v134_v62  ;;  %385 = vmatpush.msrb.mxu1 %v165_v7  ;;  %v126_v59 = vmax.f32 %v124_v50, %v125_v55  ;;  %v261_v62 = vsel %vm260_vm1, %v119_v56, %v105_v53  ;;  %v66_v0 = vadd.f32 %v65_v57, %v64_v42 }
  0x47   :  { %366 = vmatpush.msrb.mxu0 %v131_v2  ;;  %425 = vmatpush.msrb.mxu3 %v166_v18  ;;  %v73_v2 = vadd.f32 %v72_v60, %v71_v47  ;;  %v87_v3 = vadd.f32 %v86_v61, %v85_v51 }
  0x48   :  { %406 = vmatpush.msrb.mxu2 %v132_v17  ;;  %386 = vmatpush.msrb.mxu1 %v163_v23  ;;  %v262_v63 = vsel %vm260_vm1, %v126_v59, %v112_v54  ;;  %v349_v4 = vsel %vm260_vm1, %v80_v1, %v66_v0 }
  0x49   :  { %367 = vmatpush.msrb.mxu0 %v129_v22  ;;  %426 = vmatpush.msrb.mxu3 %v164_v27  ;;  %v350_v5 = vsel %vm260_vm1, %v87_v3, %v73_v2 }
  0x4a   :  { %407 = vmatpush.msrb.mxu2 %v130_v26  ;;  %387 = vmatpush.msrb.mxu1 %v161_v34 }
  0x4b   :  { %368 = vmatpush.msrb.mxu0 %v127_v33  ;;  %427 = vmatpush.msrb.mxu3 %v162_v38 }
  0x4c   :  { %408 = vmatpush.msrb.mxu2 %v128_v37  ;;  %388 = vmatpush.msrb.mxu1 %v159_v43 }
  0x4d   :  { %428 = vmatpush.msrb.mxu3 %v160_v46  ;;  %281 = vmatmul.f32.vlgmr.msra.gmra.mxu0 %v261_v62 }
  0x4e   :  { %321 = vmatmul.f32.vlgmr.msra.gmra.mxu2 %v261_v62  ;;  %341 = vmatmul.f32.vlgmr.msra.gmra.mxu3 %v262_v63 }
  0x4f   :  { %301 = vmatmul.f32.vlgmr.msra.gmra.mxu1 %v262_v63 }
  0x55   :  { %369 = vmatmul.f32.vlgmr.msrb.gmra.mxu0 %v349_v4 }
  0x56   :  { %409 = vmatmul.f32.vlgmr.msrb.gmra.mxu2 %v349_v4  ;;  %429 = vmatmul.f32.vlgmr.msrb.gmra.mxu3 %v350_v5 }
  0x57   :  { %389 = vmatmul.f32.vlgmr.msrb.gmra.mxu1 %v350_v5 }
  0xca   :  { %v282_v6 = vpop.f32.mrf.mxu0 }
  0xcc   :  { %v302_v7 = vpop.f32.mrf.mxu1 }
  0xcd   :  { %v303_v8 = vadd.f32 %v302_v7, %v282_v6 }
  0xd1   :  { %v322_v9 = vpop.f32.mrf.mxu2  ;;  %v342_v10 = vpop.f32.mrf.mxu3 }
  0xd2   :  { %v370_v11 = vpop.f32.mrf.mxu0  ;;  %v343_v15 = vadd.f32 %v342_v10, %v322_v9 }
  0xd3   :  { %v371_v12 = vadd.f32 %v370_v11, %v303_v8 }
  0xd4   :  { %v390_v13 = vpop.f32.mrf.mxu1 }
  0xd5   :  { %v391_v14 = vadd.f32 %v390_v13, %v371_v12 }
  0xd7   :  { %v496_v16 = vmul.f32 -1.442695, %v391_v14 }
  0xd9   :  { %v410_v17 = vpop.f32.mrf.mxu2  ;;  %505 = vpow2.f32 %v496_v16  ;;  %v430_v19 = vpop.f32.mrf.mxu3 }
  0xda   :  { %v411_v18 = vadd.f32 %v410_v17, %v343_v15 }
  0xdc   :  { %v431_v20 = vadd.f32 %v430_v19, %v411_v18 }
  0xde   :  { %v497_v21 = vmul.f32 -1.442695, %v431_v20 }
  0xdf   :  { %v506_v22 = vpop.eup %505 }
  0xe0   :  { %507 = vpow2.f32 %v497_v21  ;;  %v439_v23 = vadd.f32 1.0, %v506_v22 }
  0xe2   :  { %509 = vrcp.f32 %v439_v23  ;;  %vm446_vm4 = vweird.f32 %v439_v23  ;;  %v452_v37 = vand.u32 2147483648, %v439_v23  ;;  %v450_v39 = vand.u32 2147483647, %v439_v23 }
  0xe4   :  { %v453_v44 = vor.u32 1.1754944e-38, %v452_v37  ;;  %vm451_vm10 = vcmp.eq.f32.partialorder %v450_v39, 8.507059e+37 }
  0xe6   :  { %v508_v24 = vpop.eup %507 }
  0xe7   :  { %v440_v25 = vadd.f32 1.0, %v508_v24 }
  0xe8   :  { %v510_v26 = vpop.eup %509 }
  0xe9   :  { %511 = vrcp.f32 %v440_v25  ;;  %v442_v27 = vmul.f32 %v510_v26, %v439_v23  ;;  %vm447_vm2 = vweird.f32 %v510_v26  ;;  %v467_v33 = vand.u32 2147483648, %v440_v25 }
  0xea   :  { %v465_v36 = vand.u32 2147483647, %v440_v25  ;;  %vm631_vm5 = vmor %vm446_vm4, %vm447_vm2  ;;  %vm461_vm6 = vweird.f32 %v440_v25 }
  0xeb   :  { %v443_v28 = vsub.f32 1.0, %v442_v27  ;;  %v468_v41 = vor.u32 1.1754944e-38, %v467_v33 }
  0xec   :  { %vm466_vm8 = vcmp.eq.f32.partialorder %v465_v36, 8.507059e+37 }
  0xed   :  { %v444_v31 = vmul.f32 %v510_v26, %v443_v28 }
  0xef   :  { %v512_v29 = vpop.eup %511  ;;  %v445_v34 = vadd.f32 %v510_v26, %v444_v31 }
  0xf0   :  { %v457_v30 = vmul.f32 %v512_v29, %v440_v25  ;;  %vm462_vm3 = vweird.f32 %v512_v29 }
  0xf1   :  { %vm463_vm7 = vmor %vm461_vm6, %vm462_vm3  ;;  %v449_v42 = vsel %vm631_vm5, %v510_v26, %v445_v34 }
  0xf2   :  { %v458_v32 = vsub.f32 1.0, %v457_v30  ;;  %v454_v47 = vsel %vm451_vm10, %v453_v44, %v449_v42 }
  0xf4   :  { %v459_v35 = vmul.f32 %v512_v29, %v458_v32 }
  0xf6   :  { %v460_v40 = vadd.f32 %v512_v29, %v459_v35 }
  0xf8   :  { %v464_v43 = vsel %vm463_vm7, %v512_v29, %v460_v40 }
  0xf9   :  { %v469_v45 = vsel %vm466_vm8, %v468_v41, %v464_v43 }
  0xfa   :  { %v473_v46 = vrot.slane %v469_v45, 6 }
  0xfc   :  { %v475_v48 = vsel %vm474_vm9, %v454_v47, %v473_v46 }
  0xfd   :  { %477 = vst [vmem:[#allocation7] sm:$0xf] %v475_v48 }
  0xfe   :  { %488 = dma.vmem_to_hbm [thread:$0]  %s484_s1, 64, %s486_s25, [#allocation4]  }
  0xff   :  { %589 = dma.done.wait [#allocation4], 64  }
 0x100   :  { %590 = vsyncadd [#allocation4], 4294967232 }
 0x101   :  { %493 = vsyncpa [#allocation3], 1 }
 0x102   :  { %494 = vsyncpa [#allocation6], 1 }
 0x103   :  { %495 = vsyncpa [#allocation4], 1 }

</bundles_post_ra>
